<compile_context>
chip_gen: v5e
topology: v5e:2x2
jax: 0.10.0
libtpu: 0.0.40
codegen_flags: <defaults>
</compile_context>

<pallas_src>
import functools

import jax
import jax.numpy as jnp
from jax.experimental import pallas as pl
from jax.experimental.pallas import tpu as pltpu


# ----------------------------- Pallas kernel ------------------------------ #
def _concretize_kernel(cr_ref, l_t_ref, u_t_ref, lb_ref, ub_ref):
    """One grid step: concretize `tile_n` neurons.

    cr_ref : (2, D)       row 0 = input-box center, row 1 = radius
    l_t_ref: (D, tile_n)  lower-equation coefficients (transposed layout)
    u_t_ref: (D, tile_n)  upper-equation coefficients (transposed layout)
    lb_ref : (1, tile_n)  concrete lower bounds (lane-dense output)
    ub_ref : (1, tile_n)  concrete upper bounds (lane-dense output)
    """
    cr = cr_ref[...]
    c = cr[0:1, :]                       # (1, D)
    r = cr[1:2, :]                       # (1, D)

    lc = l_t_ref[...]                    # (D, tile_n)
    uc = u_t_ref[...]

    # MXU does the multiply+reduce; VPU only does abs and the final add/sub.
    lb_ref[...] = (
        jnp.dot(c, lc, preferred_element_type=jnp.float32)
        - jnp.dot(r, jnp.abs(lc), preferred_element_type=jnp.float32))
    ub_ref[...] = (
        jnp.dot(c, uc, preferred_element_type=jnp.float32)
        + jnp.dot(r, jnp.abs(uc), preferred_element_type=jnp.float32))


def _pick_tile_n(n, d, *, budget_bytes=28 << 20, max_tile=2048):
    """Largest lane-aligned tile such that the double-buffered coefficient
    streams (2 matrices x 2 pipeline buffers x tile_n x D x 4B) fit a VMEM
    budget that is safe on every generation (v7x has only 64 MiB physical).
    Small problems collapse to a single grid step."""
    n_lanes = ((n + 127) // 128) * 128          # N rounded up to lane width
    fit = budget_bytes // (2 * 2 * d * 4)       # rows that fit the budget
    fit = max(128, (fit // 128) * 128)
    return int(max(128, min(n_lanes, fit, max_tile)))


@functools.partial(jax.jit, static_argnames=("tile_n",))
def concretize_bounds(l_eq, u_eq, in_lb, in_ub, *, tile_n=None):
    """Concrete bounds from symbolic equations.

    l_eq, u_eq : [N, D+1]  (last column is the constant/bias term)
    in_lb, in_ub : [D]     concrete input interval
    returns (conc_lb, conc_ub), each [N].
    """
    n, dp1 = l_eq.shape
    d = dp1 - 1
    l_coef, l_bias = l_eq[:, :d], l_eq[:, d]
    u_coef, u_bias = u_eq[:, :d], u_eq[:, d]

    in_lb = in_lb.reshape(1, d).astype(jnp.float32)
    in_ub = in_ub.reshape(1, d).astype(jnp.float32)
    # Single (2, D) broadcast stream: [center; radius].
    cr = jnp.concatenate([(in_lb + in_ub) * 0.5, (in_ub - in_lb) * 0.5], axis=0)

    if tile_n is None:
        tile_n = _pick_tile_n(n, d)
    n_pad = pl.cdiv(n, tile_n) * tile_n

    # Lane-dense / MXU formulation wants coefficients in [D, N] layout.  In a
    # full verification pipeline the equations would be carried between layers
    # in this layout (Flatten is the identity on them); here we transpose and
    # zero-pad once in the wrapper.
    def _to_t(coef):
        coef_t = coef.astype(jnp.float32).T                  # (D, N)
        return jnp.pad(coef_t, ((0, 0), (0, n_pad - n)))

    l_t = _to_t(l_coef)
    u_t = _to_t(u_coef)

    grid = (n_pad // tile_n,)
    coef_spec = pl.BlockSpec((d, tile_n), lambda i: (0, i))
    cr_spec = pl.BlockSpec((2, d), lambda i: (0, 0))
    out_spec = pl.BlockSpec((1, tile_n), lambda i: (0, i))

    # Live blocks: 2 coef streams x 2 pipeline buffers + tiny cr/outputs.
    block_bytes = 2 * (2 * d * tile_n * 4) + 2 * (2 * tile_n * 4) + 2 * (2 * d * 4)
    vmem_limit = int(min(max(block_bytes + (8 << 20), 32 << 20), 60 << 20))

    lb_row, ub_row = pl.pallas_call(
        _concretize_kernel,
        out_shape=(jax.ShapeDtypeStruct((1, n_pad), jnp.float32),
                   jax.ShapeDtypeStruct((1, n_pad), jnp.float32)),
        grid_spec=pltpu.PrefetchScalarGridSpec(
            num_scalar_prefetch=0,
            grid=grid,
            in_specs=[cr_spec, coef_spec, coef_spec],
            out_specs=[out_spec, out_spec],
        ),
        compiler_params=pltpu.CompilerParams(
            dimension_semantics=("parallel",),
            vmem_limit_bytes=vmem_limit),
    )(cr, l_t, u_t)

    # Trivial per-neuron bias add fuses into XLA; no lane-width-1 bias streams
    # through the kernel.
    conc_lb = lb_row[0, :n] + l_bias
    conc_ub = ub_row[0, :n] + u_bias
    return conc_lb, conc_ub


# ------------------------ SymbolicInterval plumbing ------------------------ #
class SymbolicInterval:
    """Minimal JAX re-implementation of the SymbolicInterval used by Flatten.

    l / u: [N, D+1] symbolic linear equations over the D network inputs
           (last column is the constant/bias term).
    input_interval: (in_lb, in_ub), each of shape [D].
    """

    def __init__(self, input_interval, l, u):
        self.input_interval = input_interval
        self.l = l
        self.u = u
        self.conc_lb = None
        self.conc_ub = None

    def concretize(self):
        in_lb, in_ub = self.input_interval
        self.conc_lb, self.conc_ub = concretize_bounds(self.l, self.u, in_lb, in_ub)
        return self

    @property
    def conc_bounds(self):
        return self.conc_lb, self.conc_ub


class Flatten:
    """JAX/Pallas equivalent of the PyTorch Flatten interval-propagation layer."""

    def __init__(self, input_shape=None):
        self.pre_symbolic = None
        self.post_symbolic = None
        self.input_shape = input_shape
        self.output_shape = None
        if input_shape is not None:
            self.output_shape = int(jnp.prod(jnp.asarray(input_shape)))

    def __call__(self, x: SymbolicInterval) -> SymbolicInterval:
        self.pre_symbolic = x
        # Flatten is the identity on the per-neuron symbolic equations; JAX
        # arrays are immutable, so pass them through (avoids two full
        # N x (D+1) HBM copies that `.clone()` would imply).
        post = SymbolicInterval(x.input_interval, x.l, x.u)
        post.concretize()
        self.post_symbolic = post
        return post

    @property
    def pre_conc_bounds(self):
        return self.pre_symbolic.conc_bounds

    @property
    def post_conc_bounds(self):
        return self.post_symbolic.conc_bounds

    @property
    def post_conc_lb(self):
        return self.post_symbolic.conc_lb

    @property
    def post_conc_ub(self):
        return self.post_symbolic.conc_ub

    @property
    def pre_conc_lb(self):
        return self.pre_symbolic.conc_lb

    @property
    def pre_conc_ub(self):
        return self.pre_symbolic.conc_ub


# ------------------------------- reference --------------------------------- #
def _reference(l_eq, u_eq, in_lb, in_ub):
    d = in_lb.shape[0]
    lc, lb_b = l_eq[:, :d], l_eq[:, d]
    uc, ub_b = u_eq[:, :d], u_eq[:, d]
    ref_lb = jnp.maximum(lc, 0.0) @ in_lb + jnp.minimum(lc, 0.0) @ in_ub + lb_b
    ref_ub = jnp.maximum(uc, 0.0) @ in_ub + jnp.minimum(uc, 0.0) @ in_lb + ub_b
    return ref_lb, ref_ub


# ---------------------------------- main ----------------------------------- #
if __name__ == "__main__":
    key = jax.random.PRNGKey(0)
    k1, k2, k3, k4, k5, k6 = jax.random.split(key, 6)

    # Pre-flatten activation shape (C, H, W) = (4, 8, 8) -> N = 256 neurons,
    # network input dimension D = 128 (e.g. a 2x8x8 input image, flattened).
    C, H, W = 4, 8, 8
    N = C * H * W            # 256
    D = 128

    # Deterministic synthetic symbolic equations (coeffs + constant column).
    l_eq = jax.random.normal(k1, (N, D + 1), dtype=jnp.float32) * 0.1
    u_eq = l_eq + jnp.abs(jax.random.normal(k2, (N, D + 1), dtype=jnp.float32)) * 0.05

    # Deterministic concrete input interval with in_lb <= in_ub.
    center = jax.random.normal(k3, (D,), dtype=jnp.float32)
    radius = jnp.abs(jax.random.normal(k4, (D,), dtype=jnp.float32)) * 0.1
    in_lb = center - radius
    in_ub = center + radius

    x = SymbolicInterval((in_lb, in_ub), l_eq, u_eq)
    layer = Flatten(input_shape=jnp.asarray((C, H, W)))
    post = layer(x)

    lb = jax.block_until_ready(post.conc_lb)
    ub = jax.block_until_ready(post.conc_ub)

    ref_lb, ref_ub = _reference(l_eq, u_eq, in_lb, in_ub)
    assert lb.shape == (N,) and ub.shape == (N,)
    assert jnp.allclose(lb, ref_lb, atol=1e-4, rtol=1e-4)
    assert jnp.allclose(ub, ref_ub, atol=1e-4, rtol=1e-4)
    assert bool(jnp.all(ub >= lb))

    # Robustness check: N not a multiple of the lane width / tile (exercises
    # the pad-and-slice path instead of the old hard assert).
    N2 = 200
    l2 = jax.random.normal(k5, (N2, D + 1), dtype=jnp.float32) * 0.1
    u2 = l2 + jnp.abs(jax.random.normal(k6, (N2, D + 1), dtype=jnp.float32)) * 0.05
    lb2, ub2 = concretize_bounds(l2, u2, in_lb, in_ub)
    lb2 = jax.block_until_ready(lb2)
    ub2 = jax.block_until_ready(ub2)
    ref_lb2, ref_ub2 = _reference(l2, u2, in_lb, in_ub)
    assert lb2.shape == (N2,) and ub2.shape == (N2,)
    assert jnp.allclose(lb2, ref_lb2, atol=1e-4, rtol=1e-4)
    assert jnp.allclose(ub2, ref_ub2, atol=1e-4, rtol=1e-4)

    print("KERNEL_OK")
</pallas_src>

<mosaic_0001>
module attributes {stable_mosaic.version = 11 : i64} {
  func.func @_concretize_kernel(%arg0: i32, %arg1: memref<2x128xf32, #tpu.memory_space<vmem>>, %arg2: memref<128x256xf32, #tpu.memory_space<vmem>>, %arg3: memref<128x256xf32, #tpu.memory_space<vmem>>, %arg4: memref<1x256xf32, #tpu.memory_space<vmem>>, %arg5: memref<1x256xf32, #tpu.memory_space<vmem>>) attributes {dimension_semantics = [#tpu.dimension_semantics<parallel>], iteration_bounds = array<i64: 1>, scalar_prefetch = 0 : i64, scratch_operands = 0 : i64, tpu.core_type = #tpu.core_type<tc>, window_params = [{pipeline_mode = #tpu.pipeline_mode<synchronous>, transform_indices = @transform_0, window_bounds = array<i64: 2, 128>}, {transform_indices = @transform_1, window_bounds = array<i64: 128, 256>}, {transform_indices = @transform_2, window_bounds = array<i64: 128, 256>}, {transform_indices = @transform_3, window_bounds = array<i64: 1, 256>}, {transform_indices = @transform_4, window_bounds = array<i64: 1, 256>}]} {
    %c0 = arith.constant 0 : index
    %c0_0 = arith.constant 0 : index
    %0 = vector.load %arg1[%c0, %c0_0] : memref<2x128xf32, #tpu.memory_space<vmem>>, vector<2x128xf32>
    %1 = vector.extract_strided_slice %0 {offsets = [0, 0], sizes = [1, 128], strides = [1, 1]} : vector<2x128xf32> to vector<1x128xf32>
    %2 = vector.extract_strided_slice %0 {offsets = [1, 0], sizes = [1, 128], strides = [1, 1]} : vector<2x128xf32> to vector<1x128xf32>
    %c0_1 = arith.constant 0 : index
    %c0_2 = arith.constant 0 : index
    %3 = vector.load %arg2[%c0_1, %c0_2] : memref<128x256xf32, #tpu.memory_space<vmem>>, vector<128x256xf32>
    %c0_3 = arith.constant 0 : index
    %c0_4 = arith.constant 0 : index
    %4 = vector.load %arg3[%c0_3, %c0_4] : memref<128x256xf32, #tpu.memory_space<vmem>>, vector<128x256xf32>
    %cst = arith.constant dense<0.000000e+00> : vector<1x256xf32>
    %5 = tpu.matmul %1, %3, %cst {dimension_numbers = #tpu.dot_dimension_numbers<[1], [0], [0], [1], [0, 0, 1, 1], [], []>} : vector<1x128xf32>, vector<128x256xf32>, vector<1x256xf32> -> vector<1x256xf32>
    %6 = math.absf %3 : vector<128x256xf32>
    %cst_5 = arith.constant dense<0.000000e+00> : vector<1x256xf32>
    %7 = tpu.matmul %2, %6, %cst_5 {dimension_numbers = #tpu.dot_dimension_numbers<[1], [0], [0], [1], [0, 0, 1, 1], [], []>} : vector<1x128xf32>, vector<128x256xf32>, vector<1x256xf32> -> vector<1x256xf32>
    %8 = arith.subf %5, %7 : vector<1x256xf32>
    %c0_6 = arith.constant 0 : index
    %c0_7 = arith.constant 0 : index
    %9 = vector.load %arg4[%c0_6, %c0_7] : memref<1x256xf32, #tpu.memory_space<vmem>>, vector<1x256xf32>
    tpu.vector_store %arg4[%c0_6, %c0_7], %8 {strides = array<i32>} : memref<1x256xf32, #tpu.memory_space<vmem>>, vector<1x256xf32>,
    %cst_8 = arith.constant dense<0.000000e+00> : vector<1x256xf32>
    %10 = tpu.matmul %1, %4, %cst_8 {dimension_numbers = #tpu.dot_dimension_numbers<[1], [0], [0], [1], [0, 0, 1, 1], [], []>} : vector<1x128xf32>, vector<128x256xf32>, vector<1x256xf32> -> vector<1x256xf32>
    %11 = math.absf %4 : vector<128x256xf32>
    %cst_9 = arith.constant dense<0.000000e+00> : vector<1x256xf32>
    %12 = tpu.matmul %2, %11, %cst_9 {dimension_numbers = #tpu.dot_dimension_numbers<[1], [0], [0], [1], [0, 0, 1, 1], [], []>} : vector<1x128xf32>, vector<128x256xf32>, vector<1x256xf32> -> vector<1x256xf32>
    %13 = arith.addf %10, %12 : vector<1x256xf32>
    %c0_10 = arith.constant 0 : index
    %c0_11 = arith.constant 0 : index
    %14 = vector.load %arg5[%c0_10, %c0_11] : memref<1x256xf32, #tpu.memory_space<vmem>>, vector<1x256xf32>
    tpu.vector_store %arg5[%c0_10, %c0_11], %13 {strides = array<i32>} : memref<1x256xf32, #tpu.memory_space<vmem>>, vector<1x256xf32>,
    return
  }
  func.func @transform_0(%arg0: i32) -> (i32, i32) {
    %c0_i32 = arith.constant 0 : i32
    %c0_i32_0 = arith.constant 0 : i32
    %c0_i32_1 = arith.constant 0 : i32
    return %c0_i32, %c0_i32_0 : i32, i32
  }
  func.func @transform_1(%arg0: i32) -> (i32, i32) {
    %c0_i32 = arith.constant 0 : i32
    %c0_i32_0 = arith.constant 0 : i32
    return %c0_i32, %arg0 : i32, i32
  }
  func.func @transform_2(%arg0: i32) -> (i32, i32) {
    %c0_i32 = arith.constant 0 : i32
    %c0_i32_0 = arith.constant 0 : i32
    return %c0_i32, %arg0 : i32, i32
  }
  func.func @transform_3(%arg0: i32) -> (i32, i32) {
    %c0_i32 = arith.constant 0 : i32
    %c0_i32_0 = arith.constant 0 : i32
    return %c0_i32, %arg0 : i32, i32
  }
  func.func @transform_4(%arg0: i32) -> (i32, i32) {
    %c0_i32 = arith.constant 0 : i32
    %c0_i32_0 = arith.constant 0 : i32
    return %c0_i32, %arg0 : i32, i32
  }
}

</mosaic_0001>

<bundles_post_ra>
// kernel: concretize_bounds.1
= control target key start
LH: loop header
LB: loop body
LE: loop exit
PB: predicated region body
PF: predicated region fallthrough
CT: control target
= control target key end

     0   :  { %vm201_vm0 = vcmask 1040384   ;;  %s574_s1 = inlined_call_operand.vmem [shape: f32[128,256], index: 1, kind: input, shape index: {}]   ;;  %s575_s2 = inlined_call_operand.vmem [shape: f32[128,256], index: 2, kind: input, shape index: {}]   ;;  %s576_s0 = inlined_call_operand.vmem [shape: f32[2,128], index: 0, kind: input, shape index: {}]   ;;  %s577_s3 = inlined_call_operand.vmem [shape: f32[1,256], index: 3, kind: output, shape index: {0}]   ;;  %s578_s4 = inlined_call_operand.vmem [shape: f32[1,256], index: 4, kind: output, shape index: {1}]  }
   0x1   :  { %v48_v0 = vld [vmem:[%s574_s1 + $0xf8] sm:$0xff]  ;;  %v47_v1 = vld [vmem:[%s574_s1 + $0xf0] sm:$0xff]  ;;  %v46_v2 = vld [vmem:[%s574_s1 + $0xe8] sm:$0xff] }
   0x2   :  { %v152_v3 = vand.u32 2147483647, %v48_v0  ;;  %v151_v4 = vand.u32 2147483647, %v47_v1  ;;  %v150_v5 = vand.u32 2147483647, %v46_v2  ;;  %101 = vmatpush.msra.mxu1 %v48_v0  ;;  %81 = vmatpush.msra.mxu0 %v47_v1 }
   0x3   :  { %v45_v6 = vld [vmem:[%s574_s1 + $0xe0] sm:$0xff]  ;;  %v44_v7 = vld [vmem:[%s574_s1 + $0xd8] sm:$0xff]  ;;  %v43_v8 = vld [vmem:[%s574_s1 + $0xd0] sm:$0xff] }
   0x4   :  { %176 = vmatpush.msra.mxu3 %v152_v3  ;;  %156 = vmatpush.msra.mxu2 %v151_v4  ;;  %v149_v9 = vand.u32 2147483647, %v45_v6  ;;  %v148_v10 = vand.u32 2147483647, %v44_v7  ;;  %v147_v11 = vand.u32 2147483647, %v43_v8 }
   0x5   :  { %v42_v12 = vld [vmem:[%s574_s1 + $0xc8] sm:$0xff]  ;;  %102 = vmatpush.msra.mxu1 %v46_v2  ;;  %v41_v13 = vld [vmem:[%s574_s1 + $0xc0] sm:$0xff]  ;;  %v40_v14 = vld [vmem:[%s574_s1 + $0xb8] sm:$0xff]  ;;  %82 = vmatpush.msra.mxu0 %v45_v6 }
   0x6   :  { %177 = vmatpush.msra.mxu3 %v150_v5  ;;  %157 = vmatpush.msra.mxu2 %v149_v9  ;;  %v146_v15 = vand.u32 2147483647, %v42_v12  ;;  %v145_v16 = vand.u32 2147483647, %v41_v13  ;;  %v39_v17 = vld [vmem:[%s574_s1 + $0xb0] sm:$0xff]  ;;  %v38_v18 = vld [vmem:[%s574_s1 + $0xa8] sm:$0xff] }
   0x7   :  { %103 = vmatpush.msra.mxu1 %v44_v7  ;;  %83 = vmatpush.msra.mxu0 %v43_v8  ;;  %v37_v19 = vld [vmem:[%s574_s1 + $0xa0] sm:$0xff]  ;;  %v144_v20 = vand.u32 2147483647, %v40_v14  ;;  %v143_v21 = vand.u32 2147483647, %v39_v17  ;;  %v36_v22 = vld [vmem:[%s574_s1 + $0x98] sm:$0xff] }
   0x8   :  { %178 = vmatpush.msra.mxu3 %v148_v10  ;;  %158 = vmatpush.msra.mxu2 %v147_v11  ;;  %v35_v23 = vld [vmem:[%s574_s1 + $0x90] sm:$0xff]  ;;  %v142_v24 = vand.u32 2147483647, %v38_v18  ;;  %v141_v25 = vand.u32 2147483647, %v37_v19  ;;  %v34_v26 = vld [vmem:[%s574_s1 + $0x88] sm:$0xff] }
   0x9   :  { %104 = vmatpush.msra.mxu1 %v42_v12  ;;  %84 = vmatpush.msra.mxu0 %v41_v13  ;;  %v33_v27 = vld [vmem:[%s574_s1 + $0x80] sm:$0xff]  ;;  %v140_v28 = vand.u32 2147483647, %v36_v22  ;;  %v139_v29 = vand.u32 2147483647, %v35_v23  ;;  %v32_v30 = vld [vmem:[%s574_s1 + $0x78] sm:$0xff] }
   0xa   :  { %179 = vmatpush.msra.mxu3 %v146_v15  ;;  %159 = vmatpush.msra.mxu2 %v145_v16  ;;  %v31_v31 = vld [vmem:[%s574_s1 + $0x70] sm:$0xff]  ;;  %v138_v32 = vand.u32 2147483647, %v34_v26  ;;  %v137_v33 = vand.u32 2147483647, %v33_v27  ;;  %v30_v34 = vld [vmem:[%s574_s1 + $0x68] sm:$0xff] }
   0xb   :  { %105 = vmatpush.msra.mxu1 %v40_v14  ;;  %85 = vmatpush.msra.mxu0 %v39_v17  ;;  %v29_v35 = vld [vmem:[%s574_s1 + $0x60] sm:$0xff]  ;;  %v136_v36 = vand.u32 2147483647, %v32_v30  ;;  %v135_v37 = vand.u32 2147483647, %v31_v31  ;;  %v28_v38 = vld [vmem:[%s574_s1 + $0x58] sm:$0xff] }
   0xc   :  { %180 = vmatpush.msra.mxu3 %v144_v20  ;;  %160 = vmatpush.msra.mxu2 %v143_v21  ;;  %v27_v39 = vld [vmem:[%s574_s1 + $0x50] sm:$0xff]  ;;  %v134_v40 = vand.u32 2147483647, %v30_v34  ;;  %v133_v41 = vand.u32 2147483647, %v29_v35  ;;  %v26_v42 = vld [vmem:[%s574_s1 + $0x48] sm:$0xff] }
   0xd   :  { %106 = vmatpush.msra.mxu1 %v38_v18  ;;  %86 = vmatpush.msra.mxu0 %v37_v19  ;;  %v25_v43 = vld [vmem:[%s574_s1 + $0x40] sm:$0xff]  ;;  %v132_v44 = vand.u32 2147483647, %v28_v38  ;;  %v131_v45 = vand.u32 2147483647, %v27_v39  ;;  %v24_v46 = vld [vmem:[%s574_s1 + $0x38] sm:$0xff] }
   0xe   :  { %181 = vmatpush.msra.mxu3 %v142_v24  ;;  %161 = vmatpush.msra.mxu2 %v141_v25  ;;  %v23_v47 = vld [vmem:[%s574_s1 + $0x30] sm:$0xff]  ;;  %v130_v48 = vand.u32 2147483647, %v26_v42  ;;  %v129_v49 = vand.u32 2147483647, %v25_v43  ;;  %v22_v50 = vld [vmem:[%s574_s1 + $0x28] sm:$0xff] }
   0xf   :  { %107 = vmatpush.msra.mxu1 %v36_v22  ;;  %87 = vmatpush.msra.mxu0 %v35_v23  ;;  %v21_v51 = vld [vmem:[%s574_s1 + $0x20] sm:$0xff]  ;;  %v128_v52 = vand.u32 2147483647, %v24_v46  ;;  %v127_v53 = vand.u32 2147483647, %v23_v47  ;;  %v20_v54 = vld [vmem:[%s574_s1 + $0x18] sm:$0xff] }
  0x10   :  { %182 = vmatpush.msra.mxu3 %v140_v28  ;;  %162 = vmatpush.msra.mxu2 %v139_v29  ;;  %v19_v55 = vld [vmem:[%s574_s1 + $0x10] sm:$0xff]  ;;  %v126_v56 = vand.u32 2147483647, %v22_v50  ;;  %v125_v57 = vand.u32 2147483647, %v21_v51  ;;  %v18_v58 = vld [vmem:[%s574_s1 + $0x8] sm:$0xff] }
  0x11   :  { %108 = vmatpush.msra.mxu1 %v34_v26  ;;  %88 = vmatpush.msra.mxu0 %v33_v27  ;;  %v17_v59 = vld [vmem:[%s574_s1] sm:$0xff]  ;;  %v124_v60 = vand.u32 2147483647, %v20_v54  ;;  %v123_v61 = vand.u32 2147483647, %v19_v55  ;;  %v80_v0 = vld [vmem:[%s575_s2 + $0xf8] sm:$0xff] }
  0x12   :  { %183 = vmatpush.msra.mxu3 %v138_v32  ;;  %163 = vmatpush.msra.mxu2 %v137_v33  ;;  %v122_v62 = vand.u32 2147483647, %v18_v58  ;;  %v121_v63 = vand.u32 2147483647, %v17_v59  ;;  %v79_v1 = vld [vmem:[%s575_s2 + $0xf0] sm:$0xff]  ;;  %v78_v4 = vld [vmem:[%s575_s2 + $0xe8] sm:$0xff] }
  0x13   :  { %109 = vmatpush.msra.mxu1 %v32_v30  ;;  %89 = vmatpush.msra.mxu0 %v31_v31  ;;  %v240_v2 = vand.u32 2147483647, %v80_v0  ;;  %v239_v3 = vand.u32 2147483647, %v79_v1  ;;  %v77_v5 = vld [vmem:[%s575_s2 + $0xe0] sm:$0xff]  ;;  %v76_v8 = vld [vmem:[%s575_s2 + $0xd8] sm:$0xff] }
  0x14   :  { %184 = vmatpush.msra.mxu3 %v136_v36  ;;  %164 = vmatpush.msra.mxu2 %v135_v37  ;;  %v238_v6 = vand.u32 2147483647, %v78_v4  ;;  %v237_v7 = vand.u32 2147483647, %v77_v5  ;;  %v75_v9 = vld [vmem:[%s575_s2 + $0xd0] sm:$0xff]  ;;  %v74_v12 = vld [vmem:[%s575_s2 + $0xc8] sm:$0xff] }
  0x15   :  { %110 = vmatpush.msra.mxu1 %v30_v34  ;;  %90 = vmatpush.msra.mxu0 %v29_v35  ;;  %v236_v10 = vand.u32 2147483647, %v76_v8  ;;  %v235_v11 = vand.u32 2147483647, %v75_v9  ;;  %v73_v13 = vld [vmem:[%s575_s2 + $0xc0] sm:$0xff]  ;;  %v72_v16 = vld [vmem:[%s575_s2 + $0xb8] sm:$0xff] }
  0x16   :  { %185 = vmatpush.msra.mxu3 %v134_v40  ;;  %165 = vmatpush.msra.mxu2 %v133_v41  ;;  %v234_v14 = vand.u32 2147483647, %v74_v12  ;;  %v233_v15 = vand.u32 2147483647, %v73_v13  ;;  %v71_v17 = vld [vmem:[%s575_s2 + $0xb0] sm:$0xff]  ;;  %v70_v20 = vld [vmem:[%s575_s2 + $0xa8] sm:$0xff] }
  0x17   :  { %111 = vmatpush.msra.mxu1 %v28_v38  ;;  %91 = vmatpush.msra.mxu0 %v27_v39  ;;  %v232_v18 = vand.u32 2147483647, %v72_v16  ;;  %v231_v19 = vand.u32 2147483647, %v71_v17  ;;  %v69_v21 = vld [vmem:[%s575_s2 + $0xa0] sm:$0xff]  ;;  %v68_v24 = vld [vmem:[%s575_s2 + $0x98] sm:$0xff] }
  0x18   :  { %186 = vmatpush.msra.mxu3 %v132_v44  ;;  %166 = vmatpush.msra.mxu2 %v131_v45  ;;  %v230_v22 = vand.u32 2147483647, %v70_v20  ;;  %v229_v23 = vand.u32 2147483647, %v69_v21  ;;  %v67_v25 = vld [vmem:[%s575_s2 + $0x90] sm:$0xff]  ;;  %v66_v28 = vld [vmem:[%s575_s2 + $0x88] sm:$0xff] }
  0x19   :  { %112 = vmatpush.msra.mxu1 %v26_v42  ;;  %92 = vmatpush.msra.mxu0 %v25_v43  ;;  %v228_v26 = vand.u32 2147483647, %v68_v24  ;;  %v227_v27 = vand.u32 2147483647, %v67_v25  ;;  %v65_v29 = vld [vmem:[%s575_s2 + $0x80] sm:$0xff]  ;;  %v64_v33 = vld [vmem:[%s575_s2 + $0x78] sm:$0xff] }
  0x1a   :  { %187 = vmatpush.msra.mxu3 %v130_v48  ;;  %167 = vmatpush.msra.mxu2 %v129_v49  ;;  %v507_v30 = vld [vmem:[%s576_s0] sm:$0x3]  ;;  %v226_v31 = vand.u32 2147483647, %v66_v28  ;;  %v225_v32 = vand.u32 2147483647, %v65_v29 }
  0x1b   :  { %113 = vmatpush.msra.mxu1 %v24_v46  ;;  %93 = vmatpush.msra.mxu0 %v23_v47  ;;  %v63_v34 = vld [vmem:[%s575_s2 + $0x70] sm:$0xff]  ;;  %v224_v35 = vand.u32 2147483647, %v64_v33  ;;  %v516_v36 = vrot.slane %v507_v30, 1  ;;  %v62_v37 = vld [vmem:[%s575_s2 + $0x68] sm:$0xff]  ;;  %v61_v38 = vld [vmem:[%s575_s2 + $0x60] sm:$0xff] }
  0x1c   :  { %188 = vmatpush.msra.mxu3 %v128_v52  ;;  %168 = vmatpush.msra.mxu2 %v127_v53  ;;  %v223_v39 = vand.u32 2147483647, %v63_v34  ;;  %v222_v40 = vand.u32 2147483647, %v62_v37  ;;  %v60_v41 = vld [vmem:[%s575_s2 + $0x58] sm:$0xff]  ;;  %v59_v42 = vld [vmem:[%s575_s2 + $0x50] sm:$0xff] }
  0x1d   :  { %114 = vmatpush.msra.mxu1 %v22_v50  ;;  %94 = vmatpush.msra.mxu0 %v21_v51  ;;  %v221_v43 = vand.u32 2147483647, %v61_v38  ;;  %v58_v44 = vld [vmem:[%s575_s2 + $0x48] sm:$0xff]  ;;  %v57_v45 = vld [vmem:[%s575_s2 + $0x40] sm:$0xff]  ;;  %v220_v46 = vand.u32 2147483647, %v60_v41 }
  0x1e   :  { %189 = vmatpush.msra.mxu3 %v126_v56  ;;  %169 = vmatpush.msra.mxu2 %v125_v57  ;;  %v219_v47 = vand.u32 2147483647, %v59_v42  ;;  %v56_v48 = vld [vmem:[%s575_s2 + $0x38] sm:$0xff]  ;;  %v55_v49 = vld [vmem:[%s575_s2 + $0x30] sm:$0xff]  ;;  %v218_v50 = vand.u32 2147483647, %v58_v44 }
  0x1f   :  { %115 = vmatpush.msra.mxu1 %v20_v54  ;;  %95 = vmatpush.msra.mxu0 %v19_v55  ;;  %v217_v51 = vand.u32 2147483647, %v57_v45  ;;  %v54_v52 = vld [vmem:[%s575_s2 + $0x28] sm:$0xff]  ;;  %v53_v53 = vld [vmem:[%s575_s2 + $0x20] sm:$0xff]  ;;  %v216_v54 = vand.u32 2147483647, %v56_v48 }
  0x20   :  { %190 = vmatpush.msra.mxu3 %v124_v60  ;;  %170 = vmatpush.msra.mxu2 %v123_v61  ;;  %v52_v55 = vld [vmem:[%s575_s2 + $0x18] sm:$0xff]  ;;  %v215_v56 = vand.u32 2147483647, %v55_v49  ;;  %v51_v57 = vld [vmem:[%s575_s2 + $0x10] sm:$0xff]  ;;  %v49_v60 = vld [vmem:[%s575_s2] sm:$0xff] }
  0x21   :  { %116 = vmatpush.msra.mxu1 %v18_v58  ;;  %96 = vmatpush.msra.mxu0 %v17_v59  ;;  %v214_v58 = vand.u32 2147483647, %v54_v52  ;;  %v50_v59 = vld [vmem:[%s575_s2 + $0x8] sm:$0xff]  ;;  %v213_v61 = vand.u32 2147483647, %v53_v53 }
  0x22   :  { %191 = vmatpush.msra.mxu3 %v122_v62  ;;  %171 = vmatpush.msra.mxu2 %v121_v63  ;;  %v212_v62 = vand.u32 2147483647, %v52_v55  ;;  %v211_v63 = vand.u32 2147483647, %v51_v57 }
  0x23   :  { %261 = vmatpush.msrb.mxu1 %v240_v2  ;;  %241 = vmatpush.msrb.mxu0 %v239_v3  ;;  %v204_v3 = vlaneseq }
  0x24   :  { %301 = vmatpush.msrb.mxu3 %v80_v0  ;;  %281 = vmatpush.msrb.mxu2 %v79_v1  ;;  %v210_v0 = vand.u32 2147483647, %v50_v59  ;;  %v209_v1 = vand.u32 2147483647, %v49_v60 }
  0x25   :  { %262 = vmatpush.msrb.mxu1 %v238_v6  ;;  %242 = vmatpush.msrb.mxu0 %v237_v7  ;;  %vm206_vm1 = vcmp.lt.s32.totalorder %v204_v3, 256 }
  0x26   :  { %302 = vmatpush.msrb.mxu3 %v78_v4  ;;  %282 = vmatpush.msrb.mxu2 %v77_v5 }
  0x27   :  { %263 = vmatpush.msrb.mxu1 %v236_v10  ;;  %243 = vmatpush.msrb.mxu0 %v235_v11 }
  0x28   :  { %303 = vmatpush.msrb.mxu3 %v76_v8  ;;  %283 = vmatpush.msrb.mxu2 %v75_v9 }
  0x29   :  { %264 = vmatpush.msrb.mxu1 %v234_v14  ;;  %244 = vmatpush.msrb.mxu0 %v233_v15 }
  0x2a   :  { %304 = vmatpush.msrb.mxu3 %v74_v12  ;;  %284 = vmatpush.msrb.mxu2 %v73_v13 }
  0x2b   :  { %265 = vmatpush.msrb.mxu1 %v232_v18  ;;  %245 = vmatpush.msrb.mxu0 %v231_v19 }
  0x2c   :  { %305 = vmatpush.msrb.mxu3 %v72_v16  ;;  %285 = vmatpush.msrb.mxu2 %v71_v17 }
  0x2d   :  { %266 = vmatpush.msrb.mxu1 %v230_v22  ;;  %246 = vmatpush.msrb.mxu0 %v229_v23 }
  0x2e   :  { %306 = vmatpush.msrb.mxu3 %v70_v20  ;;  %286 = vmatpush.msrb.mxu2 %v69_v21 }
  0x2f   :  { %267 = vmatpush.msrb.mxu1 %v228_v26  ;;  %247 = vmatpush.msrb.mxu0 %v227_v27 }
  0x30   :  { %307 = vmatpush.msrb.mxu3 %v68_v24  ;;  %287 = vmatpush.msrb.mxu2 %v67_v25 }
  0x31   :  { %268 = vmatpush.msrb.mxu1 %v226_v31  ;;  %248 = vmatpush.msrb.mxu0 %v225_v32 }
  0x32   :  { %308 = vmatpush.msrb.mxu3 %v66_v28  ;;  %288 = vmatpush.msrb.mxu2 %v65_v29 }
  0x33   :  { %269 = vmatpush.msrb.mxu1 %v224_v35  ;;  %192 = vmatmul.f32.vlgmr.msra.gmra.mxu3 %v516_v36 }
  0x34   :  { %309 = vmatpush.msrb.mxu3 %v64_v33  ;;  %289 = vmatpush.msrb.mxu2 %v63_v34 }
  0x35   :  { %249 = vmatpush.msrb.mxu0 %v223_v39  ;;  %270 = vmatpush.msrb.mxu1 %v222_v40 }
  0x36   :  { %310 = vmatpush.msrb.mxu3 %v62_v37  ;;  %290 = vmatpush.msrb.mxu2 %v61_v38 }
  0x37   :  { %172 = vmatmul.f32.vlgmr.msra.gmra.mxu2 %v516_v36  ;;  %250 = vmatpush.msrb.mxu0 %v221_v43 }
  0x38   :  { %311 = vmatpush.msrb.mxu3 %v60_v41  ;;  %291 = vmatpush.msrb.mxu2 %v59_v42 }
  0x39   :  { %271 = vmatpush.msrb.mxu1 %v220_v46  ;;  %251 = vmatpush.msrb.mxu0 %v219_v47 }
  0x3a   :  { %312 = vmatpush.msrb.mxu3 %v58_v44  ;;  %292 = vmatpush.msrb.mxu2 %v57_v45 }
  0x3b   :  { %272 = vmatpush.msrb.mxu1 %v218_v50  ;;  %252 = vmatpush.msrb.mxu0 %v217_v51 }
  0x3c   :  { %313 = vmatpush.msrb.mxu3 %v56_v48  ;;  %293 = vmatpush.msrb.mxu2 %v55_v49 }
  0x3d   :  { %117 = vmatmul.f32.vlgmr.msra.gmra.mxu1 %v507_v30  ;;  %97 = vmatmul.f32.vlgmr.msra.gmra.mxu0 %v507_v30 }
  0x3e   :  { %314 = vmatpush.msrb.mxu3 %v54_v52  ;;  %294 = vmatpush.msrb.mxu2 %v53_v53 }
  0x3f   :  { %273 = vmatpush.msrb.mxu1 %v216_v54  ;;  %253 = vmatpush.msrb.mxu0 %v215_v56 }
  0x40   :  { %315 = vmatpush.msrb.mxu3 %v52_v55  ;;  %295 = vmatpush.msrb.mxu2 %v51_v57 }
  0x41   :  { %274 = vmatpush.msrb.mxu1 %v214_v58  ;;  %254 = vmatpush.msrb.mxu0 %v213_v61 }
  0x42   :  { %316 = vmatpush.msrb.mxu3 %v50_v59  ;;  %296 = vmatpush.msrb.mxu2 %v49_v60 }
  0x43   :  { %317 = vmatmul.f32.vlgmr.msrb.gmra.mxu3 %v507_v30  ;;  %297 = vmatmul.f32.vlgmr.msrb.gmra.mxu2 %v507_v30 }
  0x44   :  { %275 = vmatpush.msrb.mxu1 %v212_v62  ;;  %255 = vmatpush.msrb.mxu0 %v211_v63 }
  0x46   :  { %276 = vmatpush.msrb.mxu1 %v210_v0  ;;  %256 = vmatpush.msrb.mxu0 %v209_v1 }
  0x47   :  { %277 = vmatmul.f32.vlgmr.msrb.gmra.mxu1 %v516_v36  ;;  %257 = vmatmul.f32.vlgmr.msrb.gmra.mxu0 %v516_v36 }
  0xb6   :  { %v193_v2 = vpop.f32.mrf.mxu3 }
  0xba   :  { %v118_v4 = vpop.f32.mrf.mxu1  ;;  %v98_v5 = vpop.f32.mrf.mxu0 }
  0xbb   :  { %v197_v6 = vsub.f32 %v118_v4, %v193_v2  ;;  %v173_v7 = vpop.f32.mrf.mxu2 }
  0xbc   :  { %v196_v8 = vsub.f32 %v98_v5, %v173_v7 }
  0xbd   :  { %v200_v9 = vrot.slane %v197_v6, 7 }
  0xbf   :  { %v202_v10 = vsel %vm201_vm0, %v196_v8, %v200_v9 }
  0xc0   :  { %208 = vst.msk [vmem:[%s577_s3] sm:$0x3] %vm206_vm1, %v202_v10 }
  0xc4   :  { %v278_v11 = vpop.f32.mrf.mxu1  ;;  %v258_v13 = vpop.f32.mrf.mxu0 }
  0xc6   :  { %v318_v12 = vpop.f32.mrf.mxu3  ;;  %v298_v15 = vpop.f32.mrf.mxu2 }
  0xc7   :  { %v319_v14 = vadd.f32 %v318_v12, %v278_v11  ;;  %v299_v16 = vadd.f32 %v298_v15, %v258_v13 }
  0xc9   :  { %v323_v17 = vrot.slane %v319_v14, 7 }
  0xcb   :  { %v324_v18 = vsel %vm201_vm0, %v299_v16, %v323_v17 }
  0xcc   :  { %326 = vst.msk [vmem:[%s578_s4] sm:$0x3] %vm206_vm1, %v324_v18 }

</bundles_post_ra>
